<compile_context>
chip_gen: v7x
topology: tpu7x:2x2x1
jax: 0.10.0
libtpu: 0.0.40
codegen_flags: <defaults>
</compile_context>

<pallas_src>
import functools

import jax
import jax.numpy as jnp
from jax.experimental import pallas as pl
from jax.experimental.pallas import tpu as pltpu


def voice_kernel(x_ref, xnext_ref,
                 w1_ref, b1_ref, w2_ref, b2_ref, wfc_ref, bfc_ref,
                 out_ref, xext_ref, acc_ref, *, t_true, mask_tail):
    f32, bf16 = jnp.float32, jnp.bfloat16
    t = pl.program_id(1)
    nt = pl.num_programs(1)
    tt = x_ref.shape[0]                         # rows of this time tile
    cin = x_ref.shape[1]

    @pl.when(t == 0)
    def _init():
        # No previous tile: the carried prev-halo rows act as zero padding.
        xext_ref[0:8, :] = jnp.zeros((8, cin), f32)
        acc_ref[...] = jnp.zeros_like(acc_ref)

    next_on = t < nt - 1                        # a right-neighbour tile exists

    # --- assemble the haloed x window covering rows [t*tt-8, (t+1)*tt+8)
    #     with aligned 8-row stores only; prev-halo rows 0:8 were written by
    #     the previous time step (carry) or zeroed at t==0. -------------------
    xcur = x_ref[...]                                            # (tt, 13) f32
    xext_ref[8:8 + tt, :] = xcur
    xext_ref[8 + tt:16 + tt, :] = jnp.where(next_on, xnext_ref[...], 0.0)

    # One aligned load of the whole window; shifted views stay in vregs.
    xw = xext_ref[...]                                           # (tt+16, 13)

    # Carry the last 8 rows of this tile as the next step's prev-halo.
    xext_ref[0:8, :] = xcur[tt - 8:tt, :]

    # --- conv1 + ReLU on extended rows [t*tt-1, (t+1)*tt+1): the extra row on
    #     each side is exactly the h1 halo that conv2 needs.  Taps packed into
    #     the contraction dim -> ONE MXU dot (K = 3*13 = 39). -----------------
    xpk = jnp.concatenate(
        [xw[6:tt + 8, :], xw[7:tt + 9, :], xw[8:tt + 10, :]],
        axis=1).astype(bf16)                                     # (tt+2, 39)
    h1e = jnp.dot(xpk, w1_ref[...], preferred_element_type=f32) + b1_ref[...]
    h1e = jnp.maximum(h1e, 0.0)                                  # (tt+2, 64) f32

    # Rows outside [0, T_true) must be zero: they are conv2's zero padding
    # (this also neutralises the clamped/carried halo data at the edges).
    ridx = jax.lax.broadcasted_iota(jnp.int32, (tt + 2, 1), 0)
    g_ext = t * tt + ridx - 1
    h1e = jnp.where(jnp.logical_and(g_ext >= 0, g_ext < t_true), h1e, 0.0)

    # --- conv2 + ReLU straight from the h1 value in vregs, packed taps ->
    #     ONE MXU dot (K = 3*64 = 192).  Single bf16 cast of the packed LHS. --
    h1pk = jnp.concatenate(
        [h1e[0:tt, :], h1e[1:tt + 1, :], h1e[2:tt + 2, :]],
        axis=1).astype(bf16)                                     # (tt, 192)
    h2 = jnp.dot(h1pk, w2_ref[...], preferred_element_type=f32) + b2_ref[...]
    h2 = jnp.maximum(h2, 0.0)                                    # (tt, 128) f32

    if mask_tail:
        # T was padded up to a tile multiple: drop padded rows from the pool.
        g = t * tt + jax.lax.broadcasted_iota(jnp.int32, (tt, 1), 0)
        h2 = jnp.where(g < t_true, h2, 0.0)

    # --- global average pool: accumulate the T-sum (1/T folded into wfc). ---
    acc_ref[...] += jnp.sum(h2, axis=0, keepdims=True)

    @pl.when(t == nt - 1)
    def _finalize():
        logits = jnp.dot(acc_ref[...], wfc_ref[...],
                         preferred_element_type=f32) + bfc_ref[...]
        out_ref[...] = logits.astype(out_ref.dtype)


def voice_model_forward(x, params, *, t_tile=None):
    """x: (B, T, 13) float32 -> logits (B, 3) float32."""
    w1, b1, w2, b2, wfc, bfc = params
    B, T, cin = x.shape
    assert w1.shape[0] == 3 and w1.shape[1] == cin
    c1, c2, nout = w1.shape[2], w2.shape[2], wfc.shape[1]

    # ---- time-tile selection (activation footprint is ~1.5 KB per row, so
    #      big tiles are cheap and amortize the ~0.35us per-grid-step cost).
    T_CAP = 2048
    if t_tile is None:
        T8 = ((T + 7) // 8) * 8
        if T8 <= T_CAP:
            t_tile = T8
        else:
            t_tile = T_CAP
            for cand in range(T_CAP, 7, -8):          # prefer a divisor of T8
                if T8 % cand == 0:
                    t_tile = cand
                    break
    assert t_tile % 8 == 0 and t_tile >= 8
    T_pad = -(-T // t_tile) * t_tile
    if T_pad != T:                                    # zero-pad the tail
        x = jnp.pad(x, ((0, 0), (0, T_pad - T), (0, 0)))
    n_t = T_pad // t_tile
    tpb = t_tile // 8                                 # 8-row blocks per tile
    nb8 = T_pad // 8                                  # total 8-row blocks

    # Host-side prep: taps packed into the contraction dim, bf16 MXU weights,
    # (1, C) bias rows, and the 1/T of the mean pool folded into fc weight.
    w1p = w1.reshape(3 * cin, c1).astype(jnp.bfloat16)       # (39, 64)
    w2p = w2.reshape(3 * c1, c2).astype(jnp.bfloat16)        # (192, 128)
    b1r = b1.reshape(1, c1).astype(jnp.float32)
    b2r = b2.reshape(1, c2).astype(jnp.float32)
    wfc_s = wfc.astype(jnp.float32) / jnp.float32(T)
    bfcr = bfc.reshape(1, nout).astype(jnp.float32)

    def full_spec(arr):
        nd = arr.ndim
        return pl.BlockSpec(arr.shape, lambda b, t, _nd=nd: (0,) * _nd)

    kernel = functools.partial(voice_kernel, t_true=T, mask_tail=(T_pad != T))

    in_specs = [
        # current time tile of x (batch dim squeezed away)
        pl.BlockSpec((None, t_tile, cin), lambda b, t: (b, t, 0)),
        # 8-row halo block just after this tile; index clamped at the edge and
        # its contribution masked in-kernel (prev halo comes from the carry).
        pl.BlockSpec((None, 8, cin),
                     lambda b, t: (b, jnp.minimum((t + 1) * tpb, nb8 - 1), 0)),
        full_spec(w1p), full_spec(b1r),
        full_spec(w2p), full_spec(b2r),
        full_spec(wfc_s), full_spec(bfcr),
    ]

    out = pl.pallas_call(
        kernel,
        out_shape=jax.ShapeDtypeStruct((B, 1, nout), jnp.float32),
        grid=(B, n_t),
        in_specs=in_specs,
        out_specs=pl.BlockSpec((None, 1, nout), lambda b, t: (b, 0, 0)),
        scratch_shapes=[
            pltpu.VMEM((t_tile + 16, cin), jnp.float32),   # haloed x window + carry
            pltpu.VMEM((1, c2), jnp.float32),              # pooling accumulator
        ],
        compiler_params=pltpu.CompilerParams(
            dimension_semantics=("parallel", "arbitrary")),
    )(x, x, w1p, b1r, w2p, b2r, wfc_s, bfcr)
    return out.reshape(B, nout)


def init_params(key):
    k1, k2, k3, k4, k5, k6 = jax.random.split(key, 6)
    # conv weights stored as (kernel=3, Cin, Cout)  [torch layout is (Cout, Cin, k)]
    w1 = jax.random.normal(k1, (3, 13, 64), jnp.float32) * (1.0 / (13 * 3) ** 0.5)
    b1 = jax.random.normal(k2, (64,), jnp.float32) * 0.01
    w2 = jax.random.normal(k3, (3, 64, 128), jnp.float32) * (1.0 / (64 * 3) ** 0.5)
    b2 = jax.random.normal(k4, (128,), jnp.float32) * 0.01
    wfc = jax.random.normal(k5, (128, 3), jnp.float32) * (1.0 / 128 ** 0.5)
    bfc = jax.random.normal(k6, (3,), jnp.float32) * 0.01
    return (w1, b1, w2, b2, wfc, bfc)


def reference_forward(x, params):
    """Pure-JAX f32 reference matching PyTorch Conv1d semantics exactly."""
    w1, b1, w2, b2, wfc, bfc = params
    xc = jnp.transpose(x, (0, 2, 1))                       # (B, Cin, T)  (NCW)
    w1t = jnp.transpose(w1, (2, 1, 0))                     # (Cout, Cin, k)
    h = jax.lax.conv_general_dilated(xc, w1t, (1,), [(1, 1)],
                                     dimension_numbers=('NCH', 'OIH', 'NCH'))
    h = jnp.maximum(h + b1[None, :, None], 0.0)
    w2t = jnp.transpose(w2, (2, 1, 0))
    h = jax.lax.conv_general_dilated(h, w2t, (1,), [(1, 1)],
                                     dimension_numbers=('NCH', 'OIH', 'NCH'))
    h = jnp.maximum(h + b2[None, :, None], 0.0)
    pooled = jnp.mean(h, axis=-1)                          # (B, 128)
    return pooled @ wfc + bfc


def matched_reference(x, params):
    """Pure-JAX reference mirroring the kernel's bf16-operand / f32-accumulate
    matmuls (packed taps), so it agrees with the Pallas kernel to tight tol."""
    w1, b1, w2, b2, wfc, bfc = params
    bf16, f32 = jnp.bfloat16, jnp.float32

    def conv_relu(h, w, bvec):
        t_len = h.shape[1]
        hp = jnp.pad(h, ((0, 0), (1, 1), (0, 0)))
        packed = jnp.concatenate(
            [hp[:, 0:t_len], hp[:, 1:t_len + 1], hp[:, 2:t_len + 2]],
            axis=-1).astype(bf16)                          # (B, T, 3*Cin)
        wp = w.reshape(-1, w.shape[-1]).astype(bf16)       # (3*Cin, Cout)
        out = jnp.einsum('btk,kd->btd', packed, wp, preferred_element_type=f32)
        return jnp.maximum(out + bvec[None, None, :], 0.0)

    h1 = conv_relu(x, w1, b1)
    h2 = conv_relu(h1, w2, b2)
    pooled = jnp.mean(h2, axis=1)
    return pooled @ wfc + bfc


if __name__ == "__main__":
    key = jax.random.PRNGKey(0)
    kx, kp = jax.random.split(key)

    B, T, C_IN = 2, 32, 13                 # MFCC-style input
    x = jax.random.normal(kx, (B, T, C_IN), jnp.float32)
    params = init_params(kp)

    ref_match = matched_reference(x, params)   # same bf16/f32 matmul arithmetic
    ref_f32 = reference_forward(x, params)     # full-f32 semantic reference

    # 1) auto tile: whole sequence in a single 32-row time tile
    out_auto = jax.block_until_ready(jax.jit(voice_model_forward)(x, params))
    # 2) forced 8-row tiles: exercises the carried halo + pooling accumulator
    out_tiled = jax.block_until_ready(
        jax.jit(functools.partial(voice_model_forward, t_tile=8))(x, params))

    for out in (out_auto, out_tiled):
        assert out.shape == (B, 3)
        assert jnp.allclose(out, ref_match, atol=2e-3, rtol=2e-3), (out, ref_match)
        assert jnp.allclose(out, ref_f32, atol=1e-1, rtol=1e-1), (out, ref_f32)

    # 3) length not a multiple of 8: exercises the padded-T / tail-mask path
    T_odd = 27
    x_odd = jax.random.normal(jax.random.split(kx)[0], (B, T_odd, C_IN),
                              jnp.float32)
    out_odd = jax.block_until_ready(jax.jit(voice_model_forward)(x_odd, params))
    assert out_odd.shape == (B, 3)
    assert jnp.allclose(out_odd, matched_reference(x_odd, params),
                        atol=2e-3, rtol=2e-3)
    assert jnp.allclose(out_odd, reference_forward(x_odd, params),
                        atol=1e-1, rtol=1e-1)

    print("KERNEL_OK")
</pallas_src>

<mosaic_0001>
module attributes {stable_mosaic.version = 11 : i64} {
  func.func @voice_kernel(%arg0: i32, %arg1: i32, %arg2: memref<1x32x13xf32, #tpu.memory_space<vmem>>, %arg3: memref<1x8x13xf32, #tpu.memory_space<vmem>>, %arg4: memref<39x64xbf16, #tpu.memory_space<vmem>>, %arg5: memref<1x64xf32, #tpu.memory_space<vmem>>, %arg6: memref<192x128xbf16, #tpu.memory_space<vmem>>, %arg7: memref<1x128xf32, #tpu.memory_space<vmem>>, %arg8: memref<128x3xf32, #tpu.memory_space<vmem>>, %arg9: memref<1x3xf32, #tpu.memory_space<vmem>>, %arg10: memref<1x1x3xf32, #tpu.memory_space<vmem>>, %arg11: memref<48x13xf32, #tpu.memory_space<vmem>>, %arg12: memref<1x128xf32, #tpu.memory_space<vmem>>) attributes {dimension_semantics = [#tpu.dimension_semantics<parallel>, #tpu.dimension_semantics<arbitrary>], iteration_bounds = array<i64: 2, 1>, scalar_prefetch = 0 : i64, scratch_operands = 2 : i64, tpu.core_type = #tpu.core_type<tc>, window_params = [{transform_indices = @transform_0, window_bounds = array<i64: 1, 32, 13>}, {transform_indices = @transform_1, window_bounds = array<i64: 1, 8, 13>}, {pipeline_mode = #tpu.pipeline_mode<synchronous>, transform_indices = @transform_2, window_bounds = array<i64: 39, 64>}, {pipeline_mode = #tpu.pipeline_mode<synchronous>, transform_indices = @transform_3, window_bounds = array<i64: 1, 64>}, {pipeline_mode = #tpu.pipeline_mode<synchronous>, transform_indices = @transform_4, window_bounds = array<i64: 192, 128>}, {pipeline_mode = #tpu.pipeline_mode<synchronous>, transform_indices = @transform_5, window_bounds = array<i64: 1, 128>}, {pipeline_mode = #tpu.pipeline_mode<synchronous>, transform_indices = @transform_6, window_bounds = array<i64: 128, 3>}, {pipeline_mode = #tpu.pipeline_mode<synchronous>, transform_indices = @transform_7, window_bounds = array<i64: 1, 3>}, {transform_indices = @transform_8, window_bounds = array<i64: 1, 1, 3>}]} {
    %c0_i32 = arith.constant 0 : i32
    %0 = arith.cmpi eq, %arg1, %c0_i32 : i32
    %1 = arith.extui %0 : i1 to i32
    %c0_i32_0 = arith.constant 0 : i32
    %2 = arith.cmpi ne, %1, %c0_i32_0 : i32
    scf.if %2 {
      %cst_35 = arith.constant 0.000000e+00 : f32
      %62 = vector.broadcast %cst_35 : f32 to vector<8x13xf32>
      %c0_36 = arith.constant 0 : index
      %c0_37 = arith.constant 0 : index
      %63 = vector.load %arg11[%c0_36, %c0_37] : memref<48x13xf32, #tpu.memory_space<vmem>>, vector<8x13xf32>
      tpu.vector_store %arg11[%c0_36, %c0_37], %62 {strides = array<i32>} : memref<48x13xf32, #tpu.memory_space<vmem>>, vector<8x13xf32>,
      %cst_38 = arith.constant 0.000000e+00 : f32
      %64 = vector.broadcast %cst_38 : f32 to vector<1x128xf32>
      %c0_39 = arith.constant 0 : index
      %c0_40 = arith.constant 0 : index
      %65 = vector.load %arg12[%c0_39, %c0_40] : memref<1x128xf32, #tpu.memory_space<vmem>>, vector<1x128xf32>
      tpu.vector_store %arg12[%c0_39, %c0_40], %64 {strides = array<i32>} : memref<1x128xf32, #tpu.memory_space<vmem>>, vector<1x128xf32>,
    } else {
    }
    %c0_i32_1 = arith.constant 0 : i32
    %3 = arith.cmpi slt, %arg1, %c0_i32_1 : i32
    %c0 = arith.constant 0 : index
    %c0_2 = arith.constant 0 : index
    %c0_3 = arith.constant 0 : index
    %4 = vector.load %arg2[%c0, %c0_2, %c0_3] : memref<1x32x13xf32, #tpu.memory_space<vmem>>, vector<1x32x13xf32>
    %5 = vector.shape_cast %4 : vector<1x32x13xf32> to vector<32x13xf32>
    %c8 = arith.constant 8 : index
    %c0_4 = arith.constant 0 : index
    %6 = vector.load %arg11[%c8, %c0_4] : memref<48x13xf32, #tpu.memory_space<vmem>>, vector<32x13xf32>
    tpu.vector_store %arg11[%c8, %c0_4], %5 {strides = array<i32>} : memref<48x13xf32, #tpu.memory_space<vmem>>, vector<32x13xf32>,
    %c0_5 = arith.constant 0 : index
    %c0_6 = arith.constant 0 : index
    %c0_7 = arith.constant 0 : index
    %7 = vector.load %arg3[%c0_5, %c0_6, %c0_7] : memref<1x8x13xf32, #tpu.memory_space<vmem>>, vector<1x8x13xf32>
    %8 = vector.shape_cast %7 : vector<1x8x13xf32> to vector<8x13xf32>
    %cst = arith.constant 0.000000e+00 : f32
    %9 = vector.broadcast %cst : f32 to vector<8x13xf32>
    %10 = arith.select %3, %8, %9 : vector<8x13xf32>
    %c40 = arith.constant 40 : index
    %c0_8 = arith.constant 0 : index
    %11 = vector.load %arg11[%c40, %c0_8] : memref<48x13xf32, #tpu.memory_space<vmem>>, vector<8x13xf32>
    tpu.vector_store %arg11[%c40, %c0_8], %10 {strides = array<i32>} : memref<48x13xf32, #tpu.memory_space<vmem>>, vector<8x13xf32>,
    %c0_9 = arith.constant 0 : index
    %c0_10 = arith.constant 0 : index
    %12 = vector.load %arg11[%c0_9, %c0_10] : memref<48x13xf32, #tpu.memory_space<vmem>>, vector<48x13xf32>
    %13 = vector.extract_strided_slice %5 {offsets = [24, 0], sizes = [8, 13], strides = [1, 1]} : vector<32x13xf32> to vector<8x13xf32>
    %c0_11 = arith.constant 0 : index
    %c0_12 = arith.constant 0 : index
    %14 = vector.load %arg11[%c0_11, %c0_12] : memref<48x13xf32, #tpu.memory_space<vmem>>, vector<8x13xf32>
    tpu.vector_store %arg11[%c0_11, %c0_12], %13 {strides = array<i32>} : memref<48x13xf32, #tpu.memory_space<vmem>>, vector<8x13xf32>,
    %15 = vector.extract_strided_slice %12 {offsets = [6, 0], sizes = [34, 13], strides = [1, 1]} : vector<48x13xf32> to vector<34x13xf32>
    %16 = vector.extract_strided_slice %12 {offsets = [7, 0], sizes = [34, 13], strides = [1, 1]} : vector<48x13xf32> to vector<34x13xf32>
    %17 = vector.extract_strided_slice %12 {offsets = [8, 0], sizes = [34, 13], strides = [1, 1]} : vector<48x13xf32> to vector<34x13xf32>
    %18 = tpu.concatenate %15, %16, %17 in 1 : vector<34x13xf32>, vector<34x13xf32>, vector<34x13xf32> -> vector<34x39xf32>
    %19 = arith.truncf %18 : vector<34x39xf32> to vector<34x39xbf16>
    %c0_13 = arith.constant 0 : index
    %c0_14 = arith.constant 0 : index
    %20 = vector.load %arg4[%c0_13, %c0_14] : memref<39x64xbf16, #tpu.memory_space<vmem>>, vector<39x64xbf16>
    %cst_15 = arith.constant dense<0.000000e+00> : vector<34x64xf32>
    %21 = tpu.matmul %19, %20, %cst_15 {dimension_numbers = #tpu.dot_dimension_numbers<[1], [0], [0], [1], [0, 0, 1, 1], [], []>} : vector<34x39xbf16>, vector<39x64xbf16>, vector<34x64xf32> -> vector<34x64xf32>
    %c0_16 = arith.constant 0 : index
    %c0_17 = arith.constant 0 : index
    %22 = vector.load %arg5[%c0_16, %c0_17] : memref<1x64xf32, #tpu.memory_space<vmem>>, vector<1x64xf32>
    %23 = vector.broadcast %22 : vector<1x64xf32> to vector<34x64xf32>
    %24 = arith.addf %21, %23 : vector<34x64xf32>
    %cst_18 = arith.constant 0.000000e+00 : f32
    %25 = vector.broadcast %cst_18 : f32 to vector<34x64xf32>
    %26 = arith.maximumf %24, %25 : vector<34x64xf32>
    %27 = tpu.iota {dimensions = array<i32: 0>} : vector<34x1xi32>
    %c32_i32 = arith.constant 32 : i32
    %28 = arith.muli %arg1, %c32_i32 : i32
    %29 = vector.broadcast %28 : i32 to vector<34x1xi32>
    %30 = arith.addi %29, %27 : vector<34x1xi32>
    %c1_i32 = arith.constant 1 : i32
    %31 = vector.broadcast %c1_i32 : i32 to vector<34x1xi32>
    %32 = arith.subi %30, %31 : vector<34x1xi32>
    %c0_i32_19 = arith.constant 0 : i32
    %33 = vector.broadcast %c0_i32_19 : i32 to vector<34x1xi32>
    %34 = arith.cmpi sge, %32, %33 : vector<34x1xi32>
    %c32_i32_20 = arith.constant 32 : i32
    %35 = vector.broadcast %c32_i32_20 : i32 to vector<34x1xi32>
    %36 = arith.cmpi slt, %32, %35 : vector<34x1xi32>
    %37 = arith.andi %34, %36 : vector<34x1xi1>
    %cst_21 = arith.constant 0.000000e+00 : f32
    %38 = vector.shape_cast %37 : vector<34x1xi1> to vector<34x1xi1>
    %39 = vector.broadcast %38 : vector<34x1xi1> to vector<34x64xi1>
    %40 = vector.broadcast %cst_21 : f32 to vector<34x64xf32>
    %41 = arith.select %39, %26, %40 : vector<34x64xi1>, vector<34x64xf32>
    %42 = vector.extract_strided_slice %41 {offsets = [0, 0], sizes = [32, 64], strides = [1, 1]} : vector<34x64xf32> to vector<32x64xf32>
    %43 = vector.extract_strided_slice %41 {offsets = [1, 0], sizes = [32, 64], strides = [1, 1]} : vector<34x64xf32> to vector<32x64xf32>
    %44 = vector.extract_strided_slice %41 {offsets = [2, 0], sizes = [32, 64], strides = [1, 1]} : vector<34x64xf32> to vector<32x64xf32>
    %45 = tpu.concatenate %42, %43, %44 in 1 : vector<32x64xf32>, vector<32x64xf32>, vector<32x64xf32> -> vector<32x192xf32>
    %46 = arith.truncf %45 : vector<32x192xf32> to vector<32x192xbf16>
    %c0_22 = arith.constant 0 : index
    %c0_23 = arith.constant 0 : index
    %47 = vector.load %arg6[%c0_22, %c0_23] : memref<192x128xbf16, #tpu.memory_space<vmem>>, vector<192x128xbf16>
    %cst_24 = arith.constant dense<0.000000e+00> : vector<32x128xf32>
    %48 = tpu.matmul %46, %47, %cst_24 {dimension_numbers = #tpu.dot_dimension_numbers<[1], [0], [0], [1], [0, 0, 1, 1], [], []>} : vector<32x192xbf16>, vector<192x128xbf16>, vector<32x128xf32> -> vector<32x128xf32>
    %c0_25 = arith.constant 0 : index
    %c0_26 = arith.constant 0 : index
    %49 = vector.load %arg7[%c0_25, %c0_26] : memref<1x128xf32, #tpu.memory_space<vmem>>, vector<1x128xf32>
    %50 = vector.broadcast %49 : vector<1x128xf32> to vector<32x128xf32>
    %51 = arith.addf %48, %50 : vector<32x128xf32>
    %cst_27 = arith.constant 0.000000e+00 : f32
    %52 = vector.broadcast %cst_27 : f32 to vector<32x128xf32>
    %53 = arith.maximumf %51, %52 : vector<32x128xf32>
    %c0_28 = arith.constant 0 : index
    %c0_29 = arith.constant 0 : index
    %54 = vector.load %arg12[%c0_28, %c0_29] : memref<1x128xf32, #tpu.memory_space<vmem>>, vector<1x128xf32>
    %cst_30 = arith.constant dense<0.000000e+00> : vector<128xf32>
    %55 = vector.multi_reduction <add>, %53, %cst_30 [0] : vector<32x128xf32> to vector<128xf32>
    %56 = vector.shape_cast %55 : vector<128xf32> to vector<1x128xf32>
    %57 = arith.addf %54, %56 : vector<1x128xf32>
    %c0_31 = arith.constant 0 : index
    %c0_32 = arith.constant 0 : index
    %58 = vector.load %arg12[%c0_31, %c0_32] : memref<1x128xf32, #tpu.memory_space<vmem>>, vector<1x128xf32>
    tpu.vector_store %arg12[%c0_31, %c0_32], %57 {strides = array<i32>} : memref<1x128xf32, #tpu.memory_space<vmem>>, vector<1x128xf32>,
    %c0_i32_33 = arith.constant 0 : i32
    %59 = arith.cmpi eq, %arg1, %c0_i32_33 : i32
    %60 = arith.extui %59 : i1 to i32
    %c0_i32_34 = arith.constant 0 : i32
    %61 = arith.cmpi ne, %60, %c0_i32_34 : i32
    scf.if %61 {
      %c0_35 = arith.constant 0 : index
      %c0_36 = arith.constant 0 : index
      %62 = vector.load %arg12[%c0_35, %c0_36] : memref<1x128xf32, #tpu.memory_space<vmem>>, vector<1x128xf32>
      %c0_37 = arith.constant 0 : index
      %c0_38 = arith.constant 0 : index
      %63 = vector.load %arg8[%c0_37, %c0_38] : memref<128x3xf32, #tpu.memory_space<vmem>>, vector<128x3xf32>
      %cst_39 = arith.constant dense<0.000000e+00> : vector<1x3xf32>
      %64 = tpu.matmul %62, %63, %cst_39 {dimension_numbers = #tpu.dot_dimension_numbers<[1], [0], [0], [1], [0, 0, 1, 1], [], []>} : vector<1x128xf32>, vector<128x3xf32>, vector<1x3xf32> -> vector<1x3xf32>
      %c0_40 = arith.constant 0 : index
      %c0_41 = arith.constant 0 : index
      %65 = vector.load %arg9[%c0_40, %c0_41] : memref<1x3xf32, #tpu.memory_space<vmem>>, vector<1x3xf32>
      %66 = arith.addf %64, %65 : vector<1x3xf32>
      %c0_42 = arith.constant 0 : index
      %c0_43 = arith.constant 0 : index
      %c0_44 = arith.constant 0 : index
      %67 = vector.load %arg10[%c0_42, %c0_43, %c0_44] : memref<1x1x3xf32, #tpu.memory_space<vmem>>, vector<1x1x3xf32>
      %68 = vector.shape_cast %67 : vector<1x1x3xf32> to vector<1x3xf32>
      %69 = vector.shape_cast %66 : vector<1x3xf32> to vector<1x1x3xf32>
      tpu.vector_store %arg10[%c0_42, %c0_43, %c0_44], %69 {strides = array<i32>} : memref<1x1x3xf32, #tpu.memory_space<vmem>>, vector<1x1x3xf32>,
    } else {
    }
    return
  }
  func.func @transform_0(%arg0: i32, %arg1: i32) -> (i32, i32, i32) {
    %c0_i32 = arith.constant 0 : i32
    %c0_i32_0 = arith.constant 0 : i32
    return %arg0, %arg1, %c0_i32 : i32, i32, i32
  }
  func.func @transform_1(%arg0: i32, %arg1: i32) -> (i32, i32, i32) {
    %c1_i32 = arith.constant 1 : i32
    %0 = arith.addi %arg1, %c1_i32 : i32
    %c4_i32 = arith.constant 4 : i32
    %1 = arith.muli %0, %c4_i32 : i32
    %c3_i32 = arith.constant 3 : i32
    %2 = arith.minsi %1, %c3_i32 : i32
    %c0_i32 = arith.constant 0 : i32
    %c0_i32_0 = arith.constant 0 : i32
    return %arg0, %2, %c0_i32 : i32, i32, i32
  }
  func.func @transform_2(%arg0: i32, %arg1: i32) -> (i32, i32) {
    %c0_i32 = arith.constant 0 : i32
    %c0_i32_0 = arith.constant 0 : i32
    %c0_i32_1 = arith.constant 0 : i32
    return %c0_i32, %c0_i32_0 : i32, i32
  }
  func.func @transform_3(%arg0: i32, %arg1: i32) -> (i32, i32) {
    %c0_i32 = arith.constant 0 : i32
    %c0_i32_0 = arith.constant 0 : i32
    %c0_i32_1 = arith.constant 0 : i32
    return %c0_i32, %c0_i32_0 : i32, i32
  }
  func.func @transform_4(%arg0: i32, %arg1: i32) -> (i32, i32) {
    %c0_i32 = arith.constant 0 : i32
    %c0_i32_0 = arith.constant 0 : i32
    %c0_i32_1 = arith.constant 0 : i32
    return %c0_i32, %c0_i32_0 : i32, i32
  }
  func.func @transform_5(%arg0: i32, %arg1: i32) -> (i32, i32) {
    %c0_i32 = arith.constant 0 : i32
    %c0_i32_0 = arith.constant 0 : i32
    %c0_i32_1 = arith.constant 0 : i32
    return %c0_i32, %c0_i32_0 : i32, i32
  }
  func.func @transform_6(%arg0: i32, %arg1: i32) -> (i32, i32) {
    %c0_i32 = arith.constant 0 : i32
    %c0_i32_0 = arith.constant 0 : i32
    %c0_i32_1 = arith.constant 0 : i32
    return %c0_i32, %c0_i32_0 : i32, i32
  }
  func.func @transform_7(%arg0: i32, %arg1: i32) -> (i32, i32) {
    %c0_i32 = arith.constant 0 : i32
    %c0_i32_0 = arith.constant 0 : i32
    %c0_i32_1 = arith.constant 0 : i32
    return %c0_i32, %c0_i32_0 : i32, i32
  }
  func.func @transform_8(%arg0: i32, %arg1: i32) -> (i32, i32, i32) {
    %c0_i32 = arith.constant 0 : i32
    %c0_i32_0 = arith.constant 0 : i32
    %c0_i32_1 = arith.constant 0 : i32
    return %arg0, %c0_i32, %c0_i32_0 : i32, i32, i32
  }
}

</mosaic_0001>

<bundles_post_ra>
// kernel: voice_model_forward.1
= control target key start
LH: loop header
LB: loop body
LE: loop exit
PB: predicated region body
PF: predicated region fallthrough
CT: control target
= control target key end

     0   :  { %13 = vsyncpa [#allocation5], 0  ;;  %s1726_s0 = inlined_call_operand.vmem [shape: f32[2,32,13], index: 0, kind: input, shape index: {}, may-alias: {0,1}]   ;;  %s1727_s1 = inlined_call_operand.vmem [shape: f32[2,32,13], index: 1, kind: input, shape index: {}, may-alias: {0,1}]   ;;  %s1728_s2 = inlined_call_operand.vmem [shape: bf16[39,64], index: 2, kind: input, shape index: {}]   ;;  %s1729_s3 = inlined_call_operand.vmem [shape: f32[1,64], index: 3, kind: input, shape index: {}]   ;;  %s1730_s4 = inlined_call_operand.vmem [shape: bf16[192,128], index: 4, kind: input, shape index: {}]   ;;  %s1731_s5 = inlined_call_operand.vmem [shape: f32[1,128], index: 5, kind: input, shape index: {}]   ;;  %s1732_s6 = inlined_call_operand.vmem [shape: f32[128,3], index: 6, kind: input, shape index: {}]   ;;  %s1733_s7 = inlined_call_operand.vmem [shape: f32[1,3], index: 7, kind: input, shape index: {}]   ;;  %s1734_s8 = inlined_call_operand.hbm [shape: f32[2,1,3], index: 8, kind: output, shape index: {}]  }
   0x1   :  { %15 = vsyncpa [#allocation5 + $0x1], 0  ;;  %s1454_s26 = smov 0   ;;  %s1456_s27 = smov 0  }
   0x2   :  { %s1458_s28 = smov 0   ;;  %s1460_s29 = smov 0  }
   0x3   :  { %s1462_s30 = smov 0   ;;  %s1464_s9 = smov 0  }
   0x4 LB: > { %s1070_s10 = sadd.s32 4294967295, %s1398_s9   ;;  %s1071_s11 = sadd.s32 4294967294, %s1398_s9   ;;  %s1398_s9 = sphi %s1464_s9, %s21_s9   ;;  %s1394_s30 = sphi %s1462_s30, %s1741_s30   ;;  %s1390_s29 = sphi %s1460_s29, %s1740_s29   ;;  %s1386_s28 = sphi %s1458_s28, %s1739_s28   ;;  %s1382_s27 = sphi %s1456_s27, %s1738_s27   ;;  %s1378_s26 = sphi %s1454_s26, %s1737_s26  }
   0x5   : > { %s33_s12 = sadd.s32 1, %s1394_s30  ;;  %s230_s13 = sadd.s32 1, %s1386_s28 }
   0x6   : > { %p35_p0 = scmp.ge.s32.totalorder %s33_s12, 2  ;;  %p240_p1 = scmp.ne.s32.totalorder %s1386_s28, %s1382_s27 }
   0x7   : > { %p241_p2 = scmp.eq.s32.totalorder %s1070_s10, 1  ;;  %p246_p3 = scmp.ne.s32.totalorder %s1382_s27, %s1378_s26 }
   0x8   : > { %s1743_s12 = smov (%p35_p0, %s33_s12), 0  ;;  %p247_p5 = scmp.eq.s32.totalorder %s1071_s11, 1 }
   0x9   : > { %p1494_p4 = por %p241_p2, %p240_p1  ;;  %s227_s15 = ssub.s32 %s1394_s30, %s1743_s12 }
   0xa   : > { %p1074_p6 = scmp.ge.s32.totalorder %s1398_s9, 1  ;;  %p228_p7 = scmp.eq.s32.totalorder %s227_s15, 0 }
   0xb   : > { %p1501_p8 = por %p247_p5, %p246_p3  ;;  %p315_p9 = scmp.lt.s32.totalorder %s1398_s9, 3 }
   0xc   : > { %s1507_s17 = scalar_select %p228_p7, %s1386_s28, %s230_s13  }
   0xd   : > { %p316_p10 = pnand %p1074_p6, %p315_p9 }
   0xe   : > { %p365_p11 = scmp.lt.s32.totalorder (!%p316_p10), %s1390_s29, 1  ;;  %vm395_vm0 = vcmask (!%p316_p10), 105472   ;;  %v1400_v0 = vmov (!%p316_p10), 0.0   ;;  %v1305_v5 = vld [vmem:[%s1728_s2] sm:$0xff] (!%p316_p10)   ;;  %vm427_vm1 = vcmask (!%p316_p10), 1046528   ;;  %v1306_v8 = vld [vmem:[%s1728_s2 + $0x8] sm:$0xff] (!%p316_p10)  }
   0xf   : > { %319 = sbr.rel (%p316_p10) target bundleno = 996 (0x3e4), region = 52  ;;  %396 = vst.msk [vmem:[#allocation2] sm:$0xff] (!%p316_p10), %vm395_vm0, %v1400_v0  ;;  %397 = vst [vmem:[#allocation3] sm:$0x1] (!%p316_p10), %v1400_v0  ;;  %1135 = vmatprep.subr.bf16.mxu0 (!%p316_p10), %v1400_v0  ;;  %vm539_vm2 = vcmask (!%p316_p10), 1042432   ;;  %vm540_vm3 = vcmask (!%p316_p10), 1043456  }
  0x10   : > { %413 = vst.msk [vmem:[#allocation2 + $0x28] sm:$0xff] (!%p316_p10), %vm395_vm0, %v1400_v0  ;;  %1136 = vmatpush3.bf16.msra.mxu0 (!%p316_p10), %v1305_v5  ;;  %v1307_v9 = vld [vmem:[%s1728_s2 + $0x10] ss:$0 sps:$4 sm:$0xff] (!%p316_p10)   ;;  %v1401_v10 = vmov (!%p316_p10), 65535   ;;  %vm454_vm4 = vcmask (!%p316_p10), 1045504   ;;  %s1402_s13 = smov (!%p316_p10), 13  }
  0x11   : > { %1137 = vmatprep.subr.bf16.mxu0 (!%p316_p10), %v1400_v0  ;;  %v541_v11 = vsel (!%p316_p10), %vm539_vm2, 4294967295, %v1401_v10  ;;  %s1403_s15 = smov (!%p316_p10), 26   ;;  %vm1404_vm5 = vmmov (!%p316_p10), 0   ;;  %vm484_vm6 = vcmask (!%p316_p10), 211968   ;;  %vm508_vm7 = vcmask (!%p316_p10), 1044480   ;;  %s362_s10 = sand.u32 (!%p316_p10), 1, %s1382_s27  }
  0x12   : > { %v542_v15 = vsel (!%p316_p10), %vm540_vm3, %v541_v11, 0  ;;  %1141 = vmatprep.mubr.msk.bf16.mxu0 (!%p316_p10), %vm1404_vm5, %v1400_v0  ;;  %vm529_vm8 = vcmask (!%p316_p10), 318464   ;;  %v1308_v11 = vld [vmem:[%s1730_s4] sm:$0xff] (!%p316_p10)   ;;  %vm694_vm10 = vcmask (!%p316_p10), 523264   ;;  %vm968_vm12 = vcmask (!%p316_p10), 16384   ;;  %s971_s23 = scalar_lea.sflag (!%p316_p10), [#allocation5], %s362_s10 }
  0x13   : > { %v544_v28 = vand.u32 (!%p316_p10), %v1307_v9, %v542_v15  ;;  %v1312_v15 = vld [vmem:[%s1730_s4 + $0x20] sm:$0xff] (!%p316_p10)  }
  0x14   : > { %1138 = vmatpush3.bf16.msra.mxu0 (!%p316_p10), %v1306_v8 }
  0x15   : > { %1139 = vmatprep.subr.bf16.mxu0 (!%p316_p10), %v1400_v0 }
  0x16   : > { %s366_s18 = scalar_select %p365_p11, %s1390_s29, 1  ;;  %v1527_v6 = vld [vmem:[#allocation2] sm:$0xff] }
  0x17   : > { %v428_v7 = vrot.slane %v1527_v6, 1  ;;  %v419_v33 = vld [vmem:[#allocation2 + $0x28] sm:$0xff] }
  0x18   : > { %s1109_s19 = sshll.u32 %s366_s18, 5  ;;  %1140 = vmatpush3.bf16.msra.mxu0 %v544_v28  ;;  %v437_v38 = vrot.slane %v419_v33, 1  ;;  %v462_v39 = vrot.slane %v419_v33, 2  ;;  %v1319_v33 = vld [vmem:[%s1730_s4 + $0x58] sm:$0xff]   ;;  %s1406_s18 = smov 64  }
  0x19   : > { %s372_s22 = scalar_lea.vmem %s1726_s0, %s1109_s19 }
  0x1a   : > { %v399_v1 = vld [vmem:[%s372_s22] sm:$0xff]  ;;  %v400_v2 = vld [vmem:[%s372_s22 + $0x8] sm:$0xff]  ;;  %v401_v3 = vld [vmem:[%s372_s22 + $0x10] sm:$0xff] }
  0x1b   : > { %v402_v4 = vld [vmem:[%s372_s22 + $0x18] sm:$0xff]  ;;  %404 = vst.msk [vmem:[#allocation2 + $0x8] sm:$0xff] %vm395_vm0, %v399_v1  ;;  %405 = vst.msk [vmem:[#allocation2 + $0x10] sm:$0xff] %vm395_vm0, %v400_v2 }
  0x1c   : > { %406 = vst.msk [vmem:[#allocation2 + $0x18] sm:$0xff] %vm395_vm0, %v401_v3  ;;  %407 = vst.msk [vmem:[#allocation2 + $0x20] sm:$0xff] %vm395_vm0, %v402_v4 }
  0x1d   : > { %420 = vst.msk [vmem:[#allocation2] sm:$0xff] %vm395_vm0, %v402_v4 }
  0x22   : > { %v415_v12 = vld [vmem:[#allocation2 + $0x8] sm:$0xff]  ;;  %v416_v13 = vld [vmem:[#allocation2 + $0x10] sm:$0xff] }
  0x23   : > { %v417_v14 = vld [vmem:[#allocation2 + $0x18] sm:$0xff]  ;;  %v429_v16 = vrot.slane %v415_v12, 1  ;;  %v431_v17 = vrot.slane %v416_v13, 1  ;;  %v455_v18 = vrot.slane %v415_v12, 2  ;;  %v456_v19 = vrot.slane %v416_v13, 2  ;;  %v418_v20 = vld [vmem:[#allocation2 + $0x20] sm:$0xff] }
  0x24   : > { %v433_v21 = vrot.slane %v417_v14, 1  ;;  %v435_v22 = vrot.slane %v418_v20, 1  ;;  %v458_v23 = vrot.slane %v417_v14, 2  ;;  %v460_v24 = vrot.slane %v418_v20, 2 }
  0x25   : > { %v430_v25 = vsel %vm427_vm1, %v428_v7, %v429_v16  ;;  %v432_v26 = vsel %vm427_vm1, %v429_v16, %v431_v17  ;;  %v457_v27 = vsel %vm454_vm4, %v455_v18, %v456_v19  ;;  %v1313_v16 = vld [vmem:[%s1730_s4 + $0x28] sm:$0xff]  }
  0x26   : > { %v1275_v29 = vpack.i.bf16 %v432_v26, %v430_v25  ;;  %v1285_v30 = vpack.i.bf16 %v457_v27, %v455_v18  ;;  %v434_v31 = vsel %vm427_vm1, %v431_v17, %v433_v21  ;;  %v436_v32 = vsel %vm427_vm1, %v433_v21, %v435_v22  ;;  %v1314_v17 = vld [vmem:[%s1730_s4 + $0x30] sm:$0xff]   ;;  %v1315_v18 = vld [vmem:[%s1730_s4 + $0x38] sm:$0xff]  }
  0x27   : > { %v459_v34 = vsel %vm454_vm4, %v456_v19, %v458_v23  ;;  %v461_v35 = vsel %vm454_vm4, %v458_v23, %v460_v24  ;;  %v1280_v36 = vpack.i.bf16 %v436_v32, %v434_v31  ;;  %v438_v40 = vsel %vm427_vm1, %v435_v22, %v437_v38  ;;  %v1316_v19 = vld [vmem:[%s1730_s4 + $0x40] sm:$0xff]   ;;  %v1318_v21 = vld [vmem:[%s1730_s4 + $0x50] sm:$0xff]  }
  0x28   : > { %1276 = vrot.lane.b32.xlu0 %v1275_v29, %s1402_s13  ;;  %1286 = vrot.lane.b32.xlu1 %v1285_v30, %s1403_s15  ;;  %v1290_v37 = vpack.i.bf16 %v461_v35, %v459_v34  ;;  %v463_v41 = vsel %vm454_vm4, %v460_v24, %v462_v39  ;;  %v607_v22 = vlaneseq  ;;  %v1079_v24 = vld [vmem:[%s1729_s3] ss:$0 sm:$0xff] }
  0x2a   : > { %v608_v23 = vshrl.u32 %v607_v22, 7 }
  0x2c   : > { %1281 = vrot.lane.b32.xlu0 %v1280_v36, %s1402_s13  ;;  %1291 = vrot.lane.b32.xlu1 %v1290_v37, %s1403_s15  ;;  %v1086_v26 = vadd.s32 4294967295, %v608_v23 }
  0x2e   : > { %vm625_vm9 = vcmp.ge.s32.totalorder %v1086_v26, 0  ;;  %v1407_v26 = vmov 0.0|0.0  }
  0x2f   : > { %1188 = vmatprep.subr.bf16.mxu0 %v1407_v26 }
  0x30   : > { %447 = vrot.lane.b32.xlu0 %v438_v40, %s1402_s13  ;;  %472 = vrot.lane.b32.xlu1 %v463_v41, %s1403_s15  ;;  %v612_v41 = vadd.s32 32, %v608_v23  ;;  %v881_v23 = vld [vmem:[%s1732_s6] sm:$0xff]  ;;  %s1106_s15 = sshll.u32 %s1390_s29, 4  ;;  %s1408_s29 = smov [#allocation4]  }
  0x31   : > { %s1679_s22 = scalar_lea.hbm %s1734_s8, %s1106_s15  ;;  %s1324_s25 = sshll.u32 %s1408_s29, 4  ;;  %s1325_s25 = int_to_ptr.vmem [resolvable:$false] %s1324_s25 }
  0x32   : > { %s1326_s1 = scalar_lea.vmem %s1325_s25, 32 }
  0x9a   : > { %v1277_v42 = vpop.permute.xlu0 %1276  ;;  %v1287_v43 = vpop.permute.xlu1 %1286 }
  0x9b   : > { %v1279_v44 = vunpack.i.h.bf16 %v1277_v42  ;;  %v1278_v45 = vunpack.i.l.bf16 %v1277_v42  ;;  %v1289_v46 = vunpack.i.h.bf16 %v1287_v43  ;;  %v1288_v47 = vunpack.i.l.bf16 %v1287_v43 }
  0x9d   : > { %v480_v48 = vsel %vm395_vm0, %v415_v12, %v1279_v44  ;;  %v479_v49 = vsel %vm395_vm0, %v1527_v6, %v1278_v45  ;;  %v1405_v12 = vmov 0  }
  0x9e   : > { %v485_v50 = vsel %vm484_vm6, %v479_v49, %v1288_v47  ;;  %v486_v51 = vsel %vm484_vm6, %v480_v48, %v1289_v46  ;;  %v1282_v52 = vpop.permute.xlu0 %1281  ;;  %v1292_v53 = vpop.permute.xlu1 %1291  ;;  %812 = vmatprep.subr.bf16.mxu1 %v1405_v12 }
  0x9f   : > { %v1284_v54 = vunpack.i.h.bf16 %v1282_v52  ;;  %v1283_v55 = vunpack.i.l.bf16 %v1282_v52  ;;  %v1294_v56 = vunpack.i.h.bf16 %v1292_v53  ;;  %v1293_v57 = vunpack.i.l.bf16 %v1292_v53  ;;  %813 = vmatpush1.bf16.msra.mxu1 %v1308_v11 }
  0xa0   : > { %v490_v58 = vpack.c.bf16 %v486_v51, %v485_v50  ;;  %814 = vmatprep.subr.bf16.mxu1 %v1405_v12  ;;  %v1090_v50 = vadd.s32 4294967295, %v612_v41 }
  0xa1   : > { %v482_v59 = vsel %vm395_vm0, %v417_v14, %v1284_v54  ;;  %v481_v60 = vsel %vm395_vm0, %v416_v13, %v1283_v55  ;;  %v1309_v13 = vld [vmem:[%s1730_s4 + $0x8] sm:$0xff]   ;;  %v1310_v14 = vld [vmem:[%s1730_s4 + $0x10] sm:$0xff]  }
  0xa2   : > { %v487_v61 = vsel %vm484_vm6, %v481_v60, %v1293_v57  ;;  %v488_v62 = vsel %vm484_vm6, %v482_v59, %v1294_v56  ;;  %v448_v63 = vpop.permute.xlu0 %447  ;;  %v473_v1 = vpop.permute.xlu1 %472  ;;  %v509_v5 = vrot.slane %v490_v58, 3  ;;  %vm634_vm11 = vcmp.lt.s32.totalorder %v1090_v50, 32 }
  0xa3   : > { %v491_v2 = vpack.c.bf16 %v488_v62, %v487_v61  ;;  %v483_v3 = vsel %vm395_vm0, %v418_v20, %v448_v63  ;;  %815 = vmatpush1.bf16.msra.mxu1 %v1309_v13  ;;  %v1317_v20 = vld [vmem:[%s1730_s4 + $0x48] sm:$0xff]  }
  0xa4   : > { %v489_v4 = vsel %vm484_vm6, %v483_v3, %v473_v1  ;;  %816 = vmatprep.subr.bf16.mxu1 %v1405_v12 }
  0xa5   : > { %v510_v6 = vrot.slane %v491_v2, 3  ;;  %v492_v7 = vpack.c.bf16 %v489_v4, %v489_v4 }
  0xa7   : > { %v511_v8 = vsel %vm508_vm7, %v509_v5, %v510_v6  ;;  %v512_v9 = vrot.slane %v492_v7, 3  ;;  %817 = vmatpush1.bf16.msra.mxu1 %v1310_v14 }
  0xa8   : > { %1142 = vmatmul.mubr.msk.bf16.vlgmr.msra.gmra.mrb[0].mxu0 %vm529_vm8, %v511_v8  ;;  %818 = vmatprep.subr.bf16.mxu1 %v1405_v12 }
  0xa9   : > { %1145 = vmatprep.mubr.msk.bf16.mxu0 %vm1404_vm5, %v1400_v0  ;;  %v513_v10 = vsel %vm508_vm7, %v510_v6, %v512_v9 }
  0xb0   : > { %1146 = vmatmul.mubr.msk.bf16.gmra.mrb[4].mxu0 %vm529_vm8, %v513_v10 }
  0xb1   : > { %1149 = vmatprep.mubr.msk.bf16.mxu0 %vm1404_vm5, %v1400_v0 }
  0xb8   : > { %1150 = vmatmul.mubr.msk.bf16.gmra.mrb[8].mxu0 %vm529_vm8, %v512_v9 }
  0xb9   : > { %1185 = vmatprep.mubr.msk.f32.mxu0 %vm1404_vm5, %v1400_v0  ;;  %v1311_v0 = vld [vmem:[%s1730_s4 + $0x18] sm:$0xff]  }
  0xba   : > { %819 = vmatpush1.bf16.msra.mxu1 %v1311_v0 }
  0xbb   : > { %820 = vmatprep.subr.bf16.mxu1 %v1405_v12 }
  0xbe   : > { %821 = vmatpush1.bf16.msra.mxu1 %v1312_v15 }
  0xbf   : > { %822 = vmatprep.subr.bf16.mxu1 %v1405_v12 }
  0xc2   : > { %823 = vmatpush1.bf16.msra.mxu1 %v1313_v16 }
  0xc3   : > { %824 = vmatprep.subr.bf16.mxu1 %v1405_v12 }
  0xc6   : > { %825 = vmatpush1.bf16.msra.mxu1 %v1314_v17 }
  0xc7   : > { %826 = vmatprep.subr.bf16.mxu1 %v1405_v12 }
  0xca   : > { %827 = vmatpush1.bf16.msra.mxu1 %v1315_v18 }
  0xcb   : > { %828 = vmatprep.subr.bf16.mxu1 %v1405_v12 }
  0xce   : > { %829 = vmatpush1.bf16.msra.mxu1 %v1316_v19 }
  0xcf   : > { %830 = vmatprep.subr.bf16.mxu1 %v1405_v12 }
  0xd2   : > { %831 = vmatpush1.bf16.msra.mxu1 %v1317_v20 }
  0xd3   : > { %832 = vmatprep.subr.bf16.mxu1 %v1405_v12 }
  0xd6   : > { %833 = vmatpush1.bf16.msra.mxu1 %v1318_v21 }
  0xd7   : > { %834 = vmatprep.subr.bf16.mxu1 %v1405_v12 }
  0xda   : > { %835 = vmatpush1.bf16.msra.mxu1 %v1319_v33  ;;  %v887_v33 = vld [vmem:[%s1732_s6 + $0x30] sm:$0xff] }
 0x17b   : > { %v580_v25 = vpop.f32.mrb[0].mxu0 }
 0x17c   : > { %v581_v27 = vadd.f32 %v1079_v24, %v580_v25  ;;  %v1143_v28 = vpop.f32.mrb[1].mxu0 }
 0x17d   : > { %v583_v29 = vpop.f32.mrb[2].mxu0  ;;  %v884_v28 = vld [vmem:[%s1732_s6 + $0x18] sm:$0xff] }
 0x17e   : > { %v602_v30 = vmax.f32 %v581_v27, 0.0  ;;  %v584_v31 = vadd.f32 %v1079_v24, %v583_v29  ;;  %v1144_v32 = vpop.f32.mrb[3].mxu0  ;;  %v883_v27 = vld [vmem:[%s1732_s6 + $0x10] sm:$0xff] }
 0x17f   : > { %v1192_v29 = vpack.c.bf16 %v884_v28, %v883_v27 }
 0x180   : > { %v650_v34 = vsel %vm625_vm9, %v602_v30, 0.0  ;;  %v603_v35 = vmax.f32 %v584_v31, 0.0  ;;  %v885_v30 = vld [vmem:[%s1732_s6 + $0x20] sm:$0xff]  ;;  %v886_v31 = vld [vmem:[%s1732_s6 + $0x28] sm:$0xff] }
 0x181   : > { %v660_v39 = vrot.slane %v650_v34, 1  ;;  %v681_v42 = vrot.slane %v650_v34, 2  ;;  %v1195_v32 = vpack.c.bf16 %v886_v31, %v885_v30 }
 0x182   : > { %v661_v43 = vrot.slane %v603_v35, 1  ;;  %v682_v44 = vrot.slane %v603_v35, 2 }
 0x183   : > { %v588_v36 = vpop.f32.mrb[4].mxu0 }
 0x184   : > { %v589_v37 = vadd.f32 %v1079_v24, %v588_v36  ;;  %v1147_v38 = vpop.f32.mrb[5].mxu0  ;;  %v683_v51 = vsel %vm454_vm4, %v681_v42, %v682_v44  ;;  %v662_v53 = vsel %vm427_vm1, %v660_v39, %v661_v43  ;;  %v889_v36 = vld [vmem:[%s1732_s6 + $0x40] sm:$0xff]  ;;  %v891_v39 = vld [vmem:[%s1732_s6 + $0x50] sm:$0xff] }
 0x185   : > { %v591_v40 = vpop.f32.mrb[6].mxu0  ;;  %v893_v42 = vld [vmem:[%s1732_s6 + $0x60] sm:$0xff] }
 0x186   : > { %v604_v45 = vmax.f32 %v589_v37, 0.0  ;;  %v1148_v46 = vpop.f32.mrb[7].mxu0  ;;  %v592_v47 = vadd.f32 %v1079_v24, %v591_v40  ;;  %v890_v37 = vld [vmem:[%s1732_s6 + $0x48] sm:$0xff]  ;;  %v892_v40 = vld [vmem:[%s1732_s6 + $0x58] sm:$0xff] }
 0x187   : > { %v1201_v38 = vpack.c.bf16 %v890_v37, %v889_v36  ;;  %v1204_v41 = vpack.c.bf16 %v892_v40, %v891_v39  ;;  %v896_v46 = vld [vmem:[%s1732_s6 + $0x78] sm:$0xff] }
 0x188   : > { %v663_v48 = vrot.slane %v604_v45, 1  ;;  %v684_v49 = vrot.slane %v604_v45, 2  ;;  %v605_v55 = vmax.f32 %v592_v47, 0.0 }
 0x18a   : > { %v685_v52 = vsel %vm454_vm4, %v682_v44, %v684_v49  ;;  %v664_v54 = vsel %vm427_vm1, %v661_v43, %v663_v48  ;;  %v665_v1 = vrot.slane %v605_v55, 1  ;;  %v686_v2 = vrot.slane %v605_v55, 2  ;;  %v894_v43 = vld [vmem:[%s1732_s6 + $0x68] sm:$0xff] }
 0x18b   : > { %v596_v56 = vpop.f32.mrb[8].mxu0  ;;  %v700_v57 = vpack.c.bf16 %v685_v52, %v683_v51  ;;  %v1295_v58 = vpack.i.bf16 %v664_v54, %v662_v53  ;;  %v1207_v44 = vpack.c.bf16 %v894_v43, %v893_v42 }
 0x18c   : > { %v597_v59 = vadd.f32 %v1079_v24, %v596_v56  ;;  %v1151_v60 = vpop.f32.mrb[9].mxu0  ;;  %v666_v6 = vsel %vm427_vm1, %v663_v48, %v665_v1  ;;  %v687_v8 = vsel %vm454_vm4, %v684_v49, %v686_v2  ;;  %v882_v24 = vld [vmem:[%s1732_s6 + $0x8] sm:$0xff]  ;;  %v1091_v48 = vld [vmem:[%s1731_s5] ss:$0 sm:$0xff] }
 0x18d   : > { %1104 = vmatprep.mubr.msk.bf16.mxu1 %vm694_vm10, %v700_v57  ;;  %1296 = vrot.lane.b32.xlu0 %v1295_v58, %s1406_s18  ;;  %v599_v61 = vpop.f32.mrb[10].mxu0  ;;  %v1189_v25 = vpack.c.bf16 %v882_v24, %v881_v23 }
 0x18e   : > { %v606_v62 = vmax.f32 %v597_v59, 0.0  ;;  %v1152_v63 = vpop.f32.mrb[11].mxu0 }
 0x18f   : > { %1190 = vmatpush3.bf16.msra.mxu0 %v1189_v25 }
 0x190   : > { %v654_v3 = vsel %vm634_vm11, %v606_v62, 0.0  ;;  %1191 = vmatprep.subr.bf16.mxu0 %v1407_v26 }
 0x191   : > { %v667_v4 = vrot.slane %v654_v3, 1  ;;  %v688_v5 = vrot.slane %v654_v3, 2 }
 0x193   : > { %v668_v7 = vsel %vm427_vm1, %v665_v1, %v667_v4  ;;  %v689_v9 = vsel %vm454_vm4, %v686_v2, %v688_v5  ;;  %1193 = vmatpush3.bf16.msra.mxu0 %v1192_v29 }
 0x194   : > { %v1300_v10 = vpack.i.bf16 %v668_v7, %v666_v6  ;;  %v702_v11 = vpack.c.bf16 %v689_v9, %v687_v8  ;;  %1194 = vmatprep.subr.bf16.mxu0 %v1407_v26 }
 0x196   : > { %1301 = vrot.lane.b32.xlu1 %v1300_v10, %s1406_s18  ;;  %v865_v10 = vld [vmem:[#allocation3] sm:$0x1]  ;;  %s363_s18 = scalar_lea.vmem [#allocation4], %s362_s10 }
 0x197   : > { %1196 = vmatpush3.bf16.msra.mxu0 %v1195_v32  ;;  %s983_s19 = sshll.u32 %s363_s18, 4  ;;  %s1681_s19 = int_to_ptr.vmem [resolvable:$true] %s983_s19 }
 0x198   : > { %1197 = vmatprep.subr.bf16.mxu0 %v1407_v26  ;;  %s1320_s24 = scalar_lea.vmem %s1681_s19, 16  ;;  %p1327_p1 = scmp.lt.s32.totalorder %s1681_s19, %s1325_s25 }
 0x199   : > { %p1321_p12 = scmp.ne.s32.totalorder %s1681_s19, %s1320_s24  ;;  %p1328_p2 = scmp.lt.s32.totalorder %s1326_s1, %s1320_s24 }
 0x19b   : > { %p1322_p13 = pnand %p1321_p12, %p1494_p4  ;;  %p1329_p3 = por %p1328_p2, %p1327_p1 }
 0x19d   : > { %p1323_p0 = pneg %p1322_p13 }
 0x19f   : > { %p1330_p5 = pnand %p1329_p3, %p1323_p0 }
 0x1ff   : > { %v1297_v12 = vpop.permute.xlu0 %1296 }
 0x200   : > { %v1299_v13 = vunpack.i.h.bf16 %v1297_v12  ;;  %v1298_v14 = vunpack.i.l.bf16 %v1297_v12 }
 0x202   : > { %v695_v0 = vsel %vm694_vm10, %v650_v34, %v1298_v14  ;;  %v696_v15 = vsel %vm694_vm10, %v603_v35, %v1299_v13  ;;  %v888_v34 = vld [vmem:[%s1732_s6 + $0x38] sm:$0xff]  ;;  %v897_v14 = vld [vmem:[%s1733_s7] sm:$0x1] }
 0x203   : > { %v699_v16 = vpack.c.bf16 %v696_v15, %v695_v0  ;;  %v1198_v35 = vpack.c.bf16 %v888_v34, %v887_v33 }
 0x205   : > { %845 = vmatmul.mubr.bf16.vlgmr.msra.gmra.mrb[0].mxu1 %v699_v16  ;;  %1199 = vmatpush3.bf16.msra.mxu0 %v1198_v35 }
 0x206   : > { %1105 = vmatprep.mubr.msk.bf16.mxu1 %vm694_vm10, %v702_v11  ;;  %1200 = vmatprep.subr.bf16.mxu0 %v1407_v26 }
 0x208   : > { %v1302_v17 = vpop.permute.xlu1 %1301 }
 0x209   : > { %v1304_v18 = vunpack.i.h.bf16 %v1302_v17  ;;  %v1303_v19 = vunpack.i.l.bf16 %v1302_v17  ;;  %1202 = vmatpush3.bf16.msra.mxu0 %v1201_v38 }
 0x20a   : > { %1203 = vmatprep.subr.bf16.mxu0 %v1407_v26 }
 0x20b   : > { %v697_v20 = vsel %vm694_vm10, %v604_v45, %v1303_v19  ;;  %v698_v21 = vsel %vm694_vm10, %v605_v55, %v1304_v18  ;;  %v895_v45 = vld [vmem:[%s1732_s6 + $0x70] sm:$0xff] }
 0x20c   : > { %v701_v22 = vpack.c.bf16 %v698_v21, %v697_v20  ;;  %v1210_v47 = vpack.c.bf16 %v896_v46, %v895_v45 }
 0x20d   : > { %1205 = vmatpush3.bf16.msra.mxu0 %v1204_v41 }
 0x20e   : > { %853 = vmatmul.mubr.bf16.gmra.mrb[4].mxu1 %v701_v22  ;;  %1206 = vmatprep.subr.bf16.mxu0 %v1407_v26 }
 0x211   : > { %1208 = vmatpush3.bf16.msra.mxu0 %v1207_v44 }
 0x212   : > { %1209 = vmatprep.subr.bf16.mxu0 %v1407_v26 }
 0x215   : > { %1211 = vmatpush3.bf16.msra.mxu0 %v1210_v47 }
 0x2d8   : > { %v846_v49 = vpop.f32.mrb[0].mxu1 }
 0x2d9   : > { %v847_v50 = vadd.f32 %v1091_v48, %v846_v49  ;;  %v848_v51 = vpop.f32.mrb[1].mxu1 }
 0x2da   : > { %v849_v52 = vpop.f32.mrb[2].mxu1 }
 0x2db   : > { %v850_v53 = vadd.f32 %v1091_v48, %v849_v52  ;;  %v851_v54 = vpop.f32.mrb[3].mxu1  ;;  %v861_v55 = vmax.f32 %v847_v50, 0.0 }
 0x2dd   : > { %v862_v56 = vmax.f32 %v850_v53, 0.0 }
 0x2df   : > { %v866_v57 = vadd.f32 %v862_v56, %v861_v55 }
 0x2e1   : > { %v854_v58 = vpop.f32.mrb[4].mxu1 }
 0x2e2   : > { %v855_v59 = vadd.f32 %v1091_v48, %v854_v58  ;;  %v856_v60 = vpop.f32.mrb[5].mxu1 }
 0x2e3   : > { %v857_v61 = vpop.f32.mrb[6].mxu1 }
 0x2e4   : > { %v863_v62 = vmax.f32 %v855_v59, 0.0  ;;  %v858_v63 = vadd.f32 %v1091_v48, %v857_v61  ;;  %v859_v1 = vpop.f32.mrb[7].mxu1 }
 0x2e6   : > { %v867_v2 = vadd.f32 %v866_v57, %v863_v62  ;;  %v864_v3 = vmax.f32 %v858_v63, 0.0 }
 0x2e8   : > { %v868_v4 = vadd.f32 %v867_v2, %v864_v3 }
 0x2ea   : > { %v869_v5 = vrot.slane %v868_v4, 4 }
 0x2ec   : > { %v870_v6 = vadd.f32 %v869_v5, %v868_v4 }
 0x2ee   : > { %v871_v7 = vrot.slane %v870_v6, 2 }
 0x2f0   : > { %v872_v8 = vadd.f32 %v871_v7, %v870_v6 }
 0x2f2   : > { %v873_v9 = vrot.slane %v872_v8, 1 }
 0x2f4   : > { %v874_v11 = vadd.f32 %v873_v9, %v872_v8 }
 0x2f6   : > { %v875_v12 = vadd.f32 %v874_v11, %v865_v10 }
 0x2f8   : > { %876 = vst [vmem:[#allocation3] sm:$0x1] %v875_v12 }
 0x2ff   : > { %v880_v13 = vld [vmem:[#allocation3] sm:$0x1] }
 0x300   : > { %1186 = vmatmul.mubr.f32.vlgmr.msra.gmra.mrb[12].mxu0 %v880_v13 }
 0x3d3   : > { %v964_v0 = vpop.f32.mrb[12].mxu0 }
 0x3d4   : > { %v965_v15 = vadd.f32 %v964_v0, %v897_v14  ;;  %v1187_v16 = vpop.f32.mrb[13].mxu0 }
 0x3d6   : > { %969 = vst.msk [vmem:[%s363_s18] sm:$0x1] %vm968_vm12, %v965_v15 }
 0x3d7   : > { %1333 = shalt.err (!%p1330_p5)
}
 0x3d8   : > { %s1334_s10 = scalar_lea.hbm %s1679_s22, 16  ;;  %s1338_s15 = scalar_lea.hbm %s1734_s8, 32 }
 0x3d9   : > { %p1335_p6 = scmp.ne.s32.totalorder %s1679_s22, %s1334_s10  ;;  %p1339_p10 = scmp.lt.u32.totalorder %s1679_s22, %s1734_s8 }
 0x3da   : > { %p1340_p11 = scmp.lt.u32.totalorder %s1338_s15, %s1334_s10  ;;  %p1342_p13 = scmp.lt.u32.totalorder %s1334_s10, %s1679_s22 }
 0x3db   : > { %p1336_p7 = pnand %p1335_p6, %p1494_p4 }
 0x3dc   : > { %p1341_p12 = por %p1340_p11, %p1339_p10 }
 0x3dd   : > { %p1337_p9 = pneg %p1336_p7 }
 0x3de   : > { %p1343_p0 = por %p1342_p13, %p1341_p12 }
 0x3e0   : > { %p1344_p1 = pnand %p1343_p0, %p1337_p9 }
 0x3e2   : > { %1347 = shalt.err (!%p1344_p1)
}
 0x3e3   : > { %1212 = dma.vmem_to_hbm [thread:$0]  (%p1494_p4), %s1681_s19, 16, %s1679_s22, %s971_s23  }
 0x3e4 PF: > { %p1218_p2 = scmp.ge.s32.totalorder %s1398_s9, 2  ;;  %s995_s21 = sand.u32 1, %s1378_s26  }
 0x3e5   : > { %s996_s24 = scalar_lea.sflag [#allocation5], %s995_s21 }
 0x3e6   : > { %p1215_p3 = pnand %p1218_p2, %p1501_p8 }
 0x3e8   : > { %1373 = dma.done.wait (!%p1215_p3), %s996_s24, 16  }
 0x3e9   : > { %1375 = vsyncadd (!%p1215_p3), %s996_s24, 4294967280  ;;  %s21_s9 = sadd.s32 1, %s1398_s9   ;;  %s1737_s26 = smov %s1382_s27 }
 0x3ea   : > { %p18_p5 = scmp.ge.s32.totalorder %s21_s9, 4   ;;  %s1738_s27 = smov %s1386_s28 }
 0x3eb   : > { %s1739_s28 = smov %s1507_s17  ;;  %s1740_s29 = smov %s1394_s30 }
 0x3ec   : > { %s1741_s30 = smov %s1743_s12  ;;  %20 = sbr.rel (!%p18_p5) target bundleno = 4 (0x4), region = 98 }
 0x3f3   :  { %1000 = vsyncpa [#allocation5], 1 }
 0x3f4   :  { %1002 = vsyncpa [#allocation5 + $0x1], 1 }

</bundles_post_ra>
